<compile_context>
chip_gen: v5e
topology: v5e:2x2
jax: 0.10.0
libtpu: 0.0.40
codegen_flags: <defaults>
</compile_context>

<pallas_src>
import functools

import jax
import jax.numpy as jnp
from jax.experimental import pallas as pl
from jax.experimental.pallas import tpu as pltpu

EPS = 1e-6  # torch.nn.PairwiseDistance default eps


def pd_loss_kernel(o_ref, t_ref, out_ref, *, n_rows, block_n, p, needs_mask,
                   last_block):
    i = pl.program_id(1)

    @pl.when(i == 0)
    def _():
        out_ref[...] = jnp.zeros_like(out_ref)

    diff = o_ref[...].astype(jnp.float32) - t_ref[...].astype(jnp.float32) + EPS

    # Per-row p-norm along the lane (feature) axis.
    if p == 2:
        row = jnp.sqrt(jnp.sum(diff * diff, axis=-1, keepdims=True))
    elif p == 1:
        row = jnp.sum(jnp.abs(diff), axis=-1, keepdims=True)
    else:
        a = jnp.abs(diff)
        row = jnp.power(jnp.sum(jnp.power(a, p), axis=-1, keepdims=True), 1.0 / p)

    if not needs_mask:
        out_ref[...] += jnp.sum(row, axis=0, keepdims=True)
    else:
        # Global row-block index (each split owns a contiguous range of blocks).
        global_block = pl.program_id(0) * pl.num_programs(1) + i
        is_tail = global_block >= last_block

        @pl.when(jnp.logical_not(is_tail))
        def _():
            out_ref[...] += jnp.sum(row, axis=0, keepdims=True)

        @pl.when(is_tail)
        def _():
            # Tail block may read past the true row count (unspecified data).
            # Mask AFTER the per-row norm: the select discards garbage (even
            # inf/NaN) without contaminating valid rows.
            row_ids = global_block * block_n + jax.lax.broadcasted_iota(
                jnp.int32, row.shape, 0)
            masked = jnp.where(row_ids < n_rows, row, 0.0)
            out_ref[...] += jnp.sum(masked, axis=0, keepdims=True)


def _round_up(x, m):
    return -(-x // m) * m


def _pd_loss(o, t, p=2):
    """o, t: (..., D) arrays of identical shape -> scalar mean pairwise distance."""
    assert o.shape == t.shape, (o.shape, t.shape)
    d = o.shape[-1]
    o2 = o.reshape(-1, d)
    t2 = t.reshape(-1, d)
    n = o2.shape[0]
    itemsize = o2.dtype.itemsize

    # Sublane multiple for this dtype (f32: 8, bf16: 16, int8/fp8: 32).
    sub = max(8, 32 // itemsize)
    # VMEM bytes per row: last dim pads to 128 lanes.
    row_bytes = _round_up(d, 128) * itemsize

    FAST_LIMIT = 8 * 1024 * 1024          # whole problem as one resident block
    TARGET_BLOCK_BYTES = 4 * 1024 * 1024  # per-input per-block DMA granule

    if 2 * _round_up(n, sub) * row_bytes <= FAST_LIMIT:
        # Single grid point, full-array blocks, zero pipeline overhead.
        block_n, total_blocks, num_splits, steps = n, 1, 1, 1
    else:
        block_n = max(sub, (TARGET_BLOCK_BYTES // row_bytes) // sub * sub)
        block_n = min(block_n, _round_up(n, sub))
        total_blocks = -(-n // block_n)
        num_splits = 2 if total_blocks >= 2 else 1   # 2 TCs on v7x; harmless elsewhere
        steps = -(-total_blocks // num_splits)

    needs_mask = (n % block_n != 0) or (total_blocks % num_splits != 0)

    if total_blocks % num_splits == 0:
        in_idx = lambda c, i: (c * steps + i, 0)
    else:
        # Clamp so the padded split step never indexes a wholly-OOB block; the
        # in-kernel tail mask zeroes its contribution.
        in_idx = lambda c, i: (jnp.minimum(c * steps + i, total_blocks - 1), 0)

    kernel = functools.partial(
        pd_loss_kernel, n_rows=n, block_n=block_n, p=p,
        needs_mask=needs_mask, last_block=total_blocks - 1)

    cost = pl.CostEstimate(
        flops=3 * n * d,
        transcendentals=n,
        bytes_accessed=2 * n * d * itemsize + 4 * num_splits)

    partials = pl.pallas_call(
        kernel,
        out_shape=jax.ShapeDtypeStruct((num_splits, 1), jnp.float32),
        grid_spec=pltpu.PrefetchScalarGridSpec(
            num_scalar_prefetch=0,
            grid=(num_splits, steps),
            in_specs=[
                pl.BlockSpec((block_n, d), in_idx),
                pl.BlockSpec((block_n, d), in_idx),
            ],
            out_specs=pl.BlockSpec((1, 1), lambda c, i: (c, 0)),
        ),
        compiler_params=pltpu.CompilerParams(
            # Split axis is parallel (both TCs on v7x); row-block axis is a
            # reduction into each split's resident (1,1) accumulator.
            dimension_semantics=("parallel", "arbitrary"),
            vmem_limit_bytes=32 * 1024 * 1024,
        ),
        cost_estimate=cost,
    )(o2, t2)

    # Combine per-split partial sums and take the mean (scalar epilogue in XLA).
    return jnp.sum(partials) / n


pd_loss_forward = jax.jit(_pd_loss, static_argnames=("p",))


def _reference_forward(o, t, p=2):
    """Pure-JAX reference of PDLoss (PairwiseDistance(p, eps=1e-6).mean())."""
    d = o.shape[-1]
    diff = (o.reshape(-1, d).astype(jnp.float32)
            - t.reshape(-1, d).astype(jnp.float32) + EPS)
    dist = jnp.power(jnp.sum(jnp.power(jnp.abs(diff), p), axis=-1), 1.0 / p)
    return jnp.mean(dist)


if __name__ == "__main__":
    key = jax.random.PRNGKey(0)
    k1, k2, k3, k4, k5, k6 = jax.random.split(key, 6)

    # Small case consistent with the module: two same-shape batches of vectors.
    o = jax.random.normal(k1, (2, 16), jnp.float32)
    t = jax.random.normal(k2, (2, 16), jnp.float32)
    out = pd_loss_forward(o, t)
    jax.block_until_ready(out)
    assert out.shape == (), out.shape
    ref = _reference_forward(o, t)
    assert jnp.allclose(out, ref, atol=1e-5, rtol=1e-5), (out, ref)

    # Tiled path, non-divisible rows: exercises 2-way split, clamped index map
    # and tail masking of unspecified data.
    o_big = jax.random.normal(k3, (20000, 128), jnp.float32)
    t_big = jax.random.normal(k4, (20000, 128), jnp.float32)
    out_big = pd_loss_forward(o_big, t_big)
    jax.block_until_ready(out_big)
    ref_big = _reference_forward(o_big, t_big)
    assert jnp.allclose(out_big, ref_big, atol=1e-4, rtol=1e-4), (out_big, ref_big)

    # Tiled path, exactly divisible rows/blocks: mask-free accumulation branch.
    o_div = jax.random.normal(k5, (16384, 128), jnp.float32)
    t_div = jax.random.normal(k6, (16384, 128), jnp.float32)
    out_div = pd_loss_forward(o_div, t_div)
    jax.block_until_ready(out_div)
    ref_div = _reference_forward(o_div, t_div)
    assert jnp.allclose(out_div, ref_div, atol=1e-4, rtol=1e-4), (out_div, ref_div)

    print("KERNEL_OK")
</pallas_src>

<mosaic_0001>
module attributes {stable_mosaic.version = 11 : i64} {
  func.func @pd_loss_kernel(%arg0: i32, %arg1: i32, %arg2: memref<2x16xf32, #tpu.memory_space<vmem>>, %arg3: memref<2x16xf32, #tpu.memory_space<vmem>>, %arg4: memref<1x1xf32, #tpu.memory_space<vmem>>) attributes {dimension_semantics = [#tpu.dimension_semantics<parallel>, #tpu.dimension_semantics<arbitrary>], iteration_bounds = array<i64: 1, 1>, scalar_prefetch = 0 : i64, scratch_operands = 0 : i64, tpu.core_type = #tpu.core_type<tc>, window_params = [{transform_indices = @transform_0, window_bounds = array<i64: 2, 16>}, {transform_indices = @transform_1, window_bounds = array<i64: 2, 16>}, {transform_indices = @transform_2, window_bounds = array<i64: 1, 1>}]} {
    %c0_i32 = arith.constant 0 : i32
    %0 = arith.cmpi eq, %arg1, %c0_i32 : i32
    %1 = arith.extui %0 : i1 to i32
    %c0_i32_0 = arith.constant 0 : i32
    %2 = arith.cmpi ne, %1, %c0_i32_0 : i32
    scf.if %2 {
      %cst_10 = arith.constant 0.000000e+00 : f32
      %17 = vector.broadcast %cst_10 : f32 to vector<1x1xf32>
      %c0_11 = arith.constant 0 : index
      %c0_12 = arith.constant 0 : index
      %18 = vector.load %arg4[%c0_11, %c0_12] : memref<1x1xf32, #tpu.memory_space<vmem>>, vector<1x1xf32>
      tpu.vector_store %arg4[%c0_11, %c0_12], %17 {strides = array<i32>} : memref<1x1xf32, #tpu.memory_space<vmem>>, vector<1x1xf32>,
    } else {
    }
    %c0 = arith.constant 0 : index
    %c0_1 = arith.constant 0 : index
    %3 = vector.load %arg2[%c0, %c0_1] : memref<2x16xf32, #tpu.memory_space<vmem>>, vector<2x16xf32>
    %c0_2 = arith.constant 0 : index
    %c0_3 = arith.constant 0 : index
    %4 = vector.load %arg3[%c0_2, %c0_3] : memref<2x16xf32, #tpu.memory_space<vmem>>, vector<2x16xf32>
    %5 = arith.subf %3, %4 : vector<2x16xf32>
    %cst = arith.constant 9.99999997E-7 : f32
    %6 = vector.broadcast %cst : f32 to vector<2x16xf32>
    %7 = arith.addf %5, %6 : vector<2x16xf32>
    %8 = arith.mulf %7, %7 : vector<2x16xf32>
    %cst_4 = arith.constant dense<0.000000e+00> : vector<2xf32>
    %9 = vector.multi_reduction <add>, %8, %cst_4 [1] : vector<2x16xf32> to vector<2xf32>
    %10 = vector.shape_cast %9 : vector<2xf32> to vector<2x1xf32>
    %11 = math.sqrt %10 : vector<2x1xf32>
    %c0_5 = arith.constant 0 : index
    %c0_6 = arith.constant 0 : index
    %12 = vector.load %arg4[%c0_5, %c0_6] : memref<1x1xf32, #tpu.memory_space<vmem>>, vector<1x1xf32>
    %cst_7 = arith.constant dense<0.000000e+00> : vector<1xf32>
    %13 = vector.multi_reduction <add>, %11, %cst_7 [0] : vector<2x1xf32> to vector<1xf32>
    %14 = vector.shape_cast %13 : vector<1xf32> to vector<1x1xf32>
    %15 = arith.addf %12, %14 : vector<1x1xf32>
    %c0_8 = arith.constant 0 : index
    %c0_9 = arith.constant 0 : index
    %16 = vector.load %arg4[%c0_8, %c0_9] : memref<1x1xf32, #tpu.memory_space<vmem>>, vector<1x1xf32>
    tpu.vector_store %arg4[%c0_8, %c0_9], %15 {strides = array<i32>} : memref<1x1xf32, #tpu.memory_space<vmem>>, vector<1x1xf32>,
    return
  }
  func.func @transform_0(%arg0: i32, %arg1: i32) -> (i32, i32) {
    %c1_i32 = arith.constant 1 : i32
    %0 = arith.muli %arg0, %c1_i32 : i32
    %1 = arith.addi %0, %arg1 : i32
    %c0_i32 = arith.constant 0 : i32
    %c0_i32_0 = arith.constant 0 : i32
    return %1, %c0_i32 : i32, i32
  }
  func.func @transform_1(%arg0: i32, %arg1: i32) -> (i32, i32) {
    %c1_i32 = arith.constant 1 : i32
    %0 = arith.muli %arg0, %c1_i32 : i32
    %1 = arith.addi %0, %arg1 : i32
    %c0_i32 = arith.constant 0 : i32
    %c0_i32_0 = arith.constant 0 : i32
    return %1, %c0_i32 : i32, i32
  }
  func.func @transform_2(%arg0: i32, %arg1: i32) -> (i32, i32) {
    %c0_i32 = arith.constant 0 : i32
    %c0_i32_0 = arith.constant 0 : i32
    return %arg0, %c0_i32 : i32, i32
  }
}

</mosaic_0001>

<bundles_post_ra>
// kernel: _pd_loss.1
= control target key start
LH: loop header
LB: loop body
LE: loop exit
PB: predicated region body
PF: predicated region fallthrough
CT: control target
= control target key end

     0   :  { %7 = vsyncpa [#allocation3], 0  ;;  %s219_s0 = inlined_call_operand.hbm [shape: f32[2,16], index: 0, kind: input, shape index: {}]   ;;  %s220_s1 = inlined_call_operand.hbm [shape: f32[2,16], index: 1, kind: input, shape index: {}]   ;;  %s221_s2 = inlined_call_operand.hbm [shape: f32[1,1], index: 2, kind: output, shape index: {}]  }
   0x1   :  { %8 = vsyncpa [#allocation6], 0 }
   0x2   :  { %9 = vsyncpa [#allocation4], 0  ;;  %s18_s11 = sshll.u32 %s219_s0, 4  ;;  %s189_s12 = smov [#allocation2]   ;;  %s19_s11 = int_to_ptr.hbm [resolvable:$true] %s18_s11 }
   0x3   :  { %s20_s13 = sshll.u32 %s189_s12, 4  ;;  %s32_s16 = sshll.u32 %s220_s1, 4  ;;  %s21_s13 = int_to_ptr.vmem [resolvable:$true] %s20_s13  ;;  %s33_s16 = int_to_ptr.hbm [resolvable:$true] %s32_s16 }
   0x4   :  { %23 = dma.hbm_to_vmem [thread:$0]  %s19_s11, 32, %s21_s13, [#allocation3]  }
   0x5   :  { %s190_s17 = smov [#allocation5]  }
   0x6   :  { %s34_s18 = sshll.u32 %s190_s17, 4  ;;  %s35_s18 = int_to_ptr.vmem [resolvable:$true] %s34_s18 }
   0x7   :  { %37 = dma.hbm_to_vmem [thread:$0]  %s33_s16, 32, %s35_s18, [#allocation6]  }
   0x8   :  { %183 = dma.done.wait [#allocation3], 32  }
   0x9   :  { %184 = vsyncadd [#allocation3], 4294967264 }
   0xa   :  { %185 = dma.done.wait [#allocation6], 32  }
   0xb   :  { %186 = vsyncadd [#allocation6], 4294967264  ;;  %vm52_vm0 = vcmask 0   ;;  %v191_v0 = vmov 0.0   ;;  %v54_v1 = vld [vmem:[#allocation2] sm:$0x3] }
   0xc   :  { %53 = vst.msk [vmem:[#allocation7] sm:$0x1] %vm52_vm0, %v191_v0  ;;  %v55_v2 = vld [vmem:[#allocation5] sm:$0x3]  ;;  %vm59_vm1 = vcmask 123904   ;;  %vm76_vm3 = vcmask 1041408  }
   0xd   :  { %v56_v3 = vsub.f32 %v54_v1, %v55_v2  ;;  %s192_s0 = smov [#allocation7]   ;;  %s94_s21 = sshll.u32 %s221_s2, 4  ;;  %s95_s21 = int_to_ptr.hbm [resolvable:$true] %s94_s21 }
   0xe   :  { %s92_s1 = sshll.u32 %s192_s0, 4  ;;  %s93_s1 = int_to_ptr.vmem [resolvable:$true] %s92_s1 }
   0xf   :  { %v57_v4 = vadd.f32 1e-06, %v56_v3 }
  0x11   :  { %v58_v5 = vmul.f32 %v57_v4, %v57_v4 }
  0x13   :  { %v60_v6 = vsel %vm59_vm1, %v58_v5, 0.0  ;;  %v75_v24 = vld [vmem:[#allocation7] sm:$0x1] }
  0x14   :  { %61 = vadd.xlane.f32.xlu0 %v60_v6 }
  0x87   :  { %v62_v7 = vpop.xlane.xlu0 %61 }
  0x88   :  { %109 = vrsqrt.f32 %v62_v7  ;;  %vm70_vm2 = vcmp.eq.f32.partialorder %v62_v7, inf  ;;  %v73_v15 = vand.u32 2147483648, %v62_v7  ;;  %vm72_vm4 = vcmp.eq.f32.partialorder %v62_v7, 0.0 }
  0x8e   :  { %v110_v8 = vpop.eup %109 }
  0x8f   :  { %v64_v9 = vmul.f32 %v110_v8, %v62_v7 }
  0x91   :  { %v65_v10 = vmul.f32 %v110_v8, %v64_v9 }
  0x93   :  { %v66_v11 = vmul.f32 0.5, %v65_v10 }
  0x95   :  { %v67_v12 = vsub.f32 1.5, %v66_v11 }
  0x97   :  { %v68_v13 = vmul.f32 %v110_v8, %v67_v12 }
  0x99   :  { %v69_v14 = vmul.f32 %v68_v13, %v62_v7 }
  0x9b   :  { %v71_v16 = vsel %vm70_vm2, %v62_v7, %v69_v14 }
  0x9c   :  { %v74_v17 = vsel %vm72_vm4, %v73_v15, %v71_v16 }
  0x9d   :  { %v77_v18 = vsel %vm76_vm3, %v74_v17, 0.0 }
  0x9e   :  { %v78_v19 = vrot.slane %v77_v18, 4 }
  0xa0   :  { %v79_v20 = vadd.f32 %v78_v19, %v77_v18 }
  0xa2   :  { %v80_v21 = vrot.slane %v79_v20, 2 }
  0xa4   :  { %v81_v22 = vadd.f32 %v80_v21, %v79_v20 }
  0xa6   :  { %v82_v23 = vrot.slane %v81_v22, 1 }
  0xa8   :  { %v83_v25 = vadd.f32 %v82_v23, %v81_v22 }
  0xaa   :  { %v84_v26 = vadd.f32 %v83_v25, %v75_v24 }
  0xac   :  { %86 = vst.msk [vmem:[#allocation7] sm:$0x1] %vm52_vm0, %v84_v26 }
  0xad   :  { %97 = dma.vmem_to_hbm [thread:$0]  %s93_s1, 16, %s95_s21, [#allocation4]  }
  0xae   :  { %187 = dma.done.wait [#allocation4], 16  }
  0xaf   :  { %188 = vsyncadd [#allocation4], 4294967280 }
  0xb0   :  { %102 = vsyncpa [#allocation3], 1 }
  0xb1   :  { %103 = vsyncpa [#allocation6], 1 }
  0xb2   :  { %104 = vsyncpa [#allocation4], 1 }

</bundles_post_ra>
